<compile_context>
chip_gen: v6e
topology: v6e:2x2x1
jax: 0.10.0
libtpu: 0.0.40
codegen_flags: <defaults>
</compile_context>

<pallas_src>
import jax
import jax.numpy as jnp
from jax.experimental import pallas as pl
from jax.experimental.pallas import tpu as pltpu

C = 256          # outChannels in Network2
BN_EPS = 1e-5
LEAKY_SLOPE = 0.2


def _fc_layers_kernel(x_ref, w_ref, bn_ref, o_ref):
    """x_ref: (B, C) f32; w_ref: (2, C, C) bf16 (pre-transposed, y = x @ w);
    bn_ref: (8, C) f32 rows = [gamma1, beta1, gamma2, beta2, pad...]; o_ref: (B, C) f32."""

    def conv_bn_lrelu(h, w, gamma, beta):
        # 1x1x1 Conv3d == channel matmul on the MXU (bf16 operands, f32 accumulate).
        # Conv bias omitted: exactly cancelled by the train-mode BN mean subtraction.
        y = jnp.dot(h.astype(jnp.bfloat16), w, preferred_element_type=jnp.float32)
        # BatchNorm3d, training-mode batch statistics (spatial dims are 1x1x1, so the
        # reduction is over the batch axis only); biased variance, as PyTorch uses for
        # normalization.
        mean = jnp.mean(y, axis=0, keepdims=True)
        d = y - mean
        var = jnp.mean(d * d, axis=0, keepdims=True)
        # Fused scale/shift: gamma folded into the rsqrt factor (rsqrt -> EUP slot).
        scale = gamma * jax.lax.rsqrt(var + BN_EPS)          # (1, C)
        yn = d * scale + beta                                # 2 full-tile VPU ops
        # LeakyReLU(0.2)
        return jnp.where(yn >= 0.0, yn, LEAKY_SLOPE * yn)

    x = x_ref[...]
    h = conv_bn_lrelu(x, w_ref[0], bn_ref[0:1, :], bn_ref[1:2, :])
    h = conv_bn_lrelu(h, w_ref[1], bn_ref[2:3, :], bn_ref[3:4, :])
    o_ref[...] = h.astype(o_ref.dtype)


def fc_layers_pallas(encoding, params):
    """encoding: (B, C) float32. params: dict with packed fc_layers weights.
    Returns the lane-dense (B, C) feature slab (== (B, C, 1, 1, 1) NCDHW squeezed)."""
    B = encoding.shape[0]
    # Training-mode BN with batch statistics is degenerate for B == 1 (PyTorch raises).
    assert B > 1, "BatchNorm3d in train mode requires batch size > 1"

    out = pl.pallas_call(
        _fc_layers_kernel,
        out_shape=jax.ShapeDtypeStruct((B, C), jnp.float32),
        in_specs=[
            pl.BlockSpec((B, C), lambda: (0, 0)),        # x (B, C) f32
            pl.BlockSpec((2, C, C), lambda: (0, 0, 0)),  # packed transposed weights, bf16
            pl.BlockSpec((8, C), lambda: (0, 0)),        # packed BN gamma/beta rows, f32
        ],
        out_specs=pl.BlockSpec((B, C), lambda: (0, 0)),
        compiler_params=pltpu.CompilerParams(vmem_limit_bytes=4 * 1024 * 1024),
    )(encoding, params["w_packed"], params["bn_packed"])
    return out


def init_params(key):
    """Deterministic synthetic init mimicking netUtils.weightsInit:
    conv weights ~ N(0, 0.02), conv bias = 0 (dropped: cancelled by train-mode BN),
    BN gamma ~ N(1, 0.02), BN beta = 0. Weights stored packed & pre-transposed in bf16,
    per-channel BN vectors packed into one (8, C) f32 array."""
    k1, k2, k3, k4 = jax.random.split(key, 4)
    w1 = 0.02 * jax.random.normal(k1, (C, C), jnp.float32)   # (out, in) == Conv3d weight squeezed
    w2 = 0.02 * jax.random.normal(k2, (C, C), jnp.float32)
    g1 = 1.0 + 0.02 * jax.random.normal(k3, (C,), jnp.float32)
    g2 = 1.0 + 0.02 * jax.random.normal(k4, (C,), jnp.float32)
    beta1 = jnp.zeros((C,), jnp.float32)
    beta2 = jnp.zeros((C,), jnp.float32)

    w_packed = jnp.stack([w1.T, w2.T], axis=0).astype(jnp.bfloat16)      # (2, C, C)
    bn_packed = jnp.concatenate(
        [jnp.stack([g1, beta1, g2, beta2], axis=0),
         jnp.zeros((4, C), jnp.float32)], axis=0)                        # (8, C), sublane-aligned
    return {"w_packed": w_packed, "bn_packed": bn_packed}


def network2_forward(x, params):
    # TODO(synk): backbone Encoder(params.num_points) is not defined in the provided
    # source; the pretrained point/voxel encoder is stood in by treating x as the
    # (B, 256) encoding it would produce.
    encoding = x
    features = fc_layers_pallas(encoding, params)
    # Lazy, metadata-only reshape back to the NCDHW (B, C, 1, 1, 1) shape fc_layers
    # would produce (kept outside the kernel so the kernel output stays lane-dense).
    features = features.reshape(features.shape[0], C, 1, 1, 1)
    # TODO(synk): primitives.Primitives(params, outChannels, biasTerms) is not defined
    # in the provided source; returning the fc_layers features instead.
    return features


if __name__ == "__main__":
    key = jax.random.PRNGKey(0)
    k_x, k_p = jax.random.split(key)
    B = 8
    x = jax.random.normal(k_x, (B, C), jnp.float32)   # stand-in backbone encoding
    params = init_params(k_p)

    out = network2_forward(x, params)
    out = jax.block_until_ready(out)
    assert out.shape == (B, C, 1, 1, 1)
    assert jnp.all(jnp.isfinite(out))
    print("KERNEL_OK")
</pallas_src>

<mosaic_0001>
module attributes {stable_mosaic.version = 11 : i64} {
  func.func @_fc_layers_kernel(%arg0: memref<8x256xf32, #tpu.memory_space<vmem>>, %arg1: memref<2x256x256xbf16, #tpu.memory_space<vmem>>, %arg2: memref<8x256xf32, #tpu.memory_space<vmem>>, %arg3: memref<8x256xf32, #tpu.memory_space<vmem>>) attributes {dimension_semantics = [], scalar_prefetch = 0 : i64, scratch_operands = 0 : i64, tpu.core_type = #tpu.core_type<tc>} {
    %c0 = arith.constant 0 : index
    %c0_0 = arith.constant 0 : index
    %0 = vector.load %arg0[%c0, %c0_0] : memref<8x256xf32, #tpu.memory_space<vmem>>, vector<8x256xf32>
    %c0_1 = arith.constant 0 : index
    %c0_2 = arith.constant 0 : index
    %c0_3 = arith.constant 0 : index
    %1 = vector.load %arg1[%c0_1, %c0_2, %c0_3] : memref<2x256x256xbf16, #tpu.memory_space<vmem>>, vector<1x256x256xbf16>
    %2 = vector.shape_cast %1 : vector<1x256x256xbf16> to vector<256x256xbf16>
    %c0_4 = arith.constant 0 : index
    %c0_5 = arith.constant 0 : index
    %3 = vector.load %arg2[%c0_4, %c0_5] : memref<8x256xf32, #tpu.memory_space<vmem>>, vector<1x256xf32>
    %c1 = arith.constant 1 : index
    %c0_6 = arith.constant 0 : index
    %4 = vector.load %arg2[%c1, %c0_6] : memref<8x256xf32, #tpu.memory_space<vmem>>, vector<1x256xf32>
    %5 = arith.truncf %0 : vector<8x256xf32> to vector<8x256xbf16>
    %cst = arith.constant dense<0.000000e+00> : vector<8x256xf32>
    %6 = tpu.matmul %5, %2, %cst {dimension_numbers = #tpu.dot_dimension_numbers<[1], [0], [0], [1], [0, 0, 1, 1], [], []>} : vector<8x256xbf16>, vector<256x256xbf16>, vector<8x256xf32> -> vector<8x256xf32>
    %cst_7 = arith.constant dense<0.000000e+00> : vector<256xf32>
    %7 = vector.multi_reduction <add>, %6, %cst_7 [0] : vector<8x256xf32> to vector<256xf32>
    %8 = vector.shape_cast %7 : vector<256xf32> to vector<1x256xf32>
    %cst_8 = arith.constant 8.000000e+00 : f32
    %9 = vector.broadcast %cst_8 : f32 to vector<1x256xf32>
    %10 = arith.divf %8, %9 : vector<1x256xf32>
    %11 = vector.broadcast %10 : vector<1x256xf32> to vector<8x256xf32>
    %12 = arith.subf %6, %11 : vector<8x256xf32>
    %13 = arith.mulf %12, %12 : vector<8x256xf32>
    %cst_9 = arith.constant dense<0.000000e+00> : vector<256xf32>
    %14 = vector.multi_reduction <add>, %13, %cst_9 [0] : vector<8x256xf32> to vector<256xf32>
    %15 = vector.shape_cast %14 : vector<256xf32> to vector<1x256xf32>
    %cst_10 = arith.constant 8.000000e+00 : f32
    %16 = vector.broadcast %cst_10 : f32 to vector<1x256xf32>
    %17 = arith.divf %15, %16 : vector<1x256xf32>
    %cst_11 = arith.constant 9.99999974E-6 : f32
    %18 = vector.broadcast %cst_11 : f32 to vector<1x256xf32>
    %19 = arith.addf %17, %18 : vector<1x256xf32>
    %20 = math.rsqrt %19 : vector<1x256xf32>
    %21 = arith.mulf %3, %20 : vector<1x256xf32>
    %22 = vector.broadcast %21 : vector<1x256xf32> to vector<8x256xf32>
    %23 = arith.mulf %12, %22 : vector<8x256xf32>
    %24 = vector.broadcast %4 : vector<1x256xf32> to vector<8x256xf32>
    %25 = arith.addf %23, %24 : vector<8x256xf32>
    %cst_12 = arith.constant 0.000000e+00 : f32
    %26 = vector.broadcast %cst_12 : f32 to vector<8x256xf32>
    %27 = arith.cmpf oge, %25, %26 : vector<8x256xf32>
    %cst_13 = arith.constant 2.000000e-01 : f32
    %28 = vector.broadcast %cst_13 : f32 to vector<8x256xf32>
    %29 = arith.mulf %28, %25 : vector<8x256xf32>
    %30 = arith.select %27, %25, %29 : vector<8x256xi1>, vector<8x256xf32>
    %c1_14 = arith.constant 1 : index
    %c0_15 = arith.constant 0 : index
    %c0_16 = arith.constant 0 : index
    %31 = vector.load %arg1[%c1_14, %c0_15, %c0_16] : memref<2x256x256xbf16, #tpu.memory_space<vmem>>, vector<1x256x256xbf16>
    %32 = vector.shape_cast %31 : vector<1x256x256xbf16> to vector<256x256xbf16>
    %c2 = arith.constant 2 : index
    %c0_17 = arith.constant 0 : index
    %33 = vector.load %arg2[%c2, %c0_17] : memref<8x256xf32, #tpu.memory_space<vmem>>, vector<1x256xf32>
    %c3 = arith.constant 3 : index
    %c0_18 = arith.constant 0 : index
    %34 = vector.load %arg2[%c3, %c0_18] : memref<8x256xf32, #tpu.memory_space<vmem>>, vector<1x256xf32>
    %35 = arith.truncf %30 : vector<8x256xf32> to vector<8x256xbf16>
    %cst_19 = arith.constant dense<0.000000e+00> : vector<8x256xf32>
    %36 = tpu.matmul %35, %32, %cst_19 {dimension_numbers = #tpu.dot_dimension_numbers<[1], [0], [0], [1], [0, 0, 1, 1], [], []>} : vector<8x256xbf16>, vector<256x256xbf16>, vector<8x256xf32> -> vector<8x256xf32>
    %cst_20 = arith.constant dense<0.000000e+00> : vector<256xf32>
    %37 = vector.multi_reduction <add>, %36, %cst_20 [0] : vector<8x256xf32> to vector<256xf32>
    %38 = vector.shape_cast %37 : vector<256xf32> to vector<1x256xf32>
    %cst_21 = arith.constant 8.000000e+00 : f32
    %39 = vector.broadcast %cst_21 : f32 to vector<1x256xf32>
    %40 = arith.divf %38, %39 : vector<1x256xf32>
    %41 = vector.broadcast %40 : vector<1x256xf32> to vector<8x256xf32>
    %42 = arith.subf %36, %41 : vector<8x256xf32>
    %43 = arith.mulf %42, %42 : vector<8x256xf32>
    %cst_22 = arith.constant dense<0.000000e+00> : vector<256xf32>
    %44 = vector.multi_reduction <add>, %43, %cst_22 [0] : vector<8x256xf32> to vector<256xf32>
    %45 = vector.shape_cast %44 : vector<256xf32> to vector<1x256xf32>
    %cst_23 = arith.constant 8.000000e+00 : f32
    %46 = vector.broadcast %cst_23 : f32 to vector<1x256xf32>
    %47 = arith.divf %45, %46 : vector<1x256xf32>
    %cst_24 = arith.constant 9.99999974E-6 : f32
    %48 = vector.broadcast %cst_24 : f32 to vector<1x256xf32>
    %49 = arith.addf %47, %48 : vector<1x256xf32>
    %50 = math.rsqrt %49 : vector<1x256xf32>
    %51 = arith.mulf %33, %50 : vector<1x256xf32>
    %52 = vector.broadcast %51 : vector<1x256xf32> to vector<8x256xf32>
    %53 = arith.mulf %42, %52 : vector<8x256xf32>
    %54 = vector.broadcast %34 : vector<1x256xf32> to vector<8x256xf32>
    %55 = arith.addf %53, %54 : vector<8x256xf32>
    %cst_25 = arith.constant 0.000000e+00 : f32
    %56 = vector.broadcast %cst_25 : f32 to vector<8x256xf32>
    %57 = arith.cmpf oge, %55, %56 : vector<8x256xf32>
    %cst_26 = arith.constant 2.000000e-01 : f32
    %58 = vector.broadcast %cst_26 : f32 to vector<8x256xf32>
    %59 = arith.mulf %58, %55 : vector<8x256xf32>
    %60 = arith.select %57, %55, %59 : vector<8x256xi1>, vector<8x256xf32>
    %c0_27 = arith.constant 0 : index
    %c0_28 = arith.constant 0 : index
    %61 = vector.load %arg3[%c0_27, %c0_28] : memref<8x256xf32, #tpu.memory_space<vmem>>, vector<8x256xf32>
    tpu.vector_store %arg3[%c0_27, %c0_28], %60 {strides = array<i32>} : memref<8x256xf32, #tpu.memory_space<vmem>>, vector<8x256xf32>,
    return
  }
}

</mosaic_0001>

<bundles_post_ra>
// kernel: tpu_custom_call.1
= control target key start
LH: loop header
LB: loop body
LE: loop exit
PB: predicated region body
PF: predicated region fallthrough
CT: control target
= control target key end

     0   :  { %8 = vsyncpa [#allocation3], 0  ;;  %s1043_s0 = inlined_call_operand.hbm [shape: f32[8,256], index: 0, kind: input, shape index: {}]   ;;  %s1044_s1 = inlined_call_operand.hbm [shape: bf16[2,256,256], index: 1, kind: input, shape index: {}]   ;;  %s1045_s2 = inlined_call_operand.hbm [shape: f32[8,256], index: 2, kind: input, shape index: {}]   ;;  %s1046_s3 = inlined_call_operand.hbm [shape: f32[8,256], index: 3, kind: output, shape index: {}]  }
   0x1   :  { %9 = vsyncpa [#allocation6], 0 }
   0x2   :  { %10 = vsyncpa [#allocation4], 0  ;;  %s986_s12 = smov [#allocation5]  }
   0x3   :  { %s26_s13 = sshll.u32 %s986_s12, 4  ;;  %s27_s13 = int_to_ptr.vmem [resolvable:$true] %s26_s13 }
   0x4   :  { %s908_s14 = scalar_lea.vmem %s27_s13, 8192  ;;  %p913_p1 = scmp.lt.s32.totalorder %s27_s13, %s27_s13 }
   0x5   :  { %p909_p0 = scmp.ne.s32.totalorder %s27_s13, %s908_s14  ;;  %p914_p2 = scmp.lt.s32.totalorder %s908_s14, %s908_s14 }
   0x7   :  { %p915_p3 = por %p914_p2, %p913_p1 }
   0x9   :  { %p916_p4 = pnand %p915_p3, %p909_p0 }
   0xb   :  { %919 = shalt.err (!%p916_p4)
}
   0xc   :  { %s987_s15 = smov 128   ;;  %s988_s16 = smov 8  }
   0xd   :  { %32 = dma.hbm_to_vmem [thread:$0]  %s1044_s1, 8192, %s27_s13, [#allocation6], %s987_s15, %s987_s15, %s988_s16  }
   0xe   :  { %s989_s19 = smov [#allocation2]   ;;  %s990_s21 = smov [#allocation7]  }
   0xf   :  { %s17_s20 = sshll.u32 %s989_s19, 4  ;;  %s39_s22 = sshll.u32 %s990_s21, 4  ;;  %s18_s20 = int_to_ptr.vmem [resolvable:$true] %s17_s20  ;;  %s40_s22 = int_to_ptr.vmem [resolvable:$true] %s39_s22 }
  0x10   :  { %s928_s23 = scalar_lea.vmem %s18_s20, 256  ;;  %p933_p6 = scmp.lt.s32.totalorder %s18_s20, %s18_s20 }
  0x11   :  { %p929_p5 = scmp.ne.s32.totalorder %s18_s20, %s928_s23  ;;  %p934_p7 = scmp.lt.s32.totalorder %s928_s23, %s928_s23 }
  0x13   :  { %p935_p8 = por %p934_p7, %p933_p6 }
  0x15   :  { %p936_p9 = pnand %p935_p8, %p929_p5 }
  0x17   :  { %939 = shalt.err (!%p936_p9)
}
  0x18   :  { %20 = dma.hbm_to_vmem [thread:$0]  %s1043_s0, 256, %s18_s20, [#allocation3]  }
  0x19   :  { %s948_s26 = scalar_lea.vmem %s40_s22, 256  ;;  %p953_p11 = scmp.lt.s32.totalorder %s40_s22, %s40_s22 }
  0x1a   :  { %p949_p10 = scmp.ne.s32.totalorder %s40_s22, %s948_s26  ;;  %p954_p12 = scmp.lt.s32.totalorder %s948_s26, %s948_s26 }
  0x1c   :  { %p955_p13 = por %p954_p12, %p953_p11 }
  0x1e   :  { %p956_p0 = pnand %p955_p13, %p949_p10 }
  0x20   :  { %959 = shalt.err (!%p956_p0)
}
  0x21   :  { %42 = dma.hbm_to_vmem [thread:$0]  %s1045_s2, 256, %s40_s22, [#allocation6]  }
  0x22   :  { %980 = dma.done.wait [#allocation3], 256  }
  0x23   :  { %981 = vsyncadd [#allocation3], 4294967040 }
  0x24   :  { %982 = dma.done.wait [#allocation6], 8448  }
  0x25   :  { %983 = vsyncadd [#allocation6], 4294958848  ;;  %v796_v0 = vld [vmem:[#allocation5 + $0x74] ss:$8 sps:$4 sm:$0xff]   ;;  %v798_v1 = vld [vmem:[#allocation5 + $0x70] ss:$8 sps:$4 sm:$0xff]  }
  0x26   :  { %251 = vmatprep.subr.bf16.mxu0 %v796_v0  ;;  %v799_v2 = vld [vmem:[#allocation5 + $0x64] ss:$8 sps:$4 sm:$0xff]   ;;  %v801_v3 = vld [vmem:[#allocation5 + $0x60] ss:$8 sps:$4 sm:$0xff]   ;;  %v802_v4 = vld [vmem:[#allocation5 + $0x54] ss:$8 sps:$4 sm:$0xff]  }
  0x27   :  { %252 = vmatpush1.bf16.msra.mxu0 %v798_v1  ;;  %v804_v5 = vld [vmem:[#allocation5 + $0x50] ss:$8 sps:$4 sm:$0xff]   ;;  %v805_v6 = vld [vmem:[#allocation5 + $0x44] ss:$8 sps:$4 sm:$0xff]   ;;  %v807_v7 = vld [vmem:[#allocation5 + $0x40] ss:$8 sps:$4 sm:$0xff]  }
  0x28   :  { %253 = vmatprep.subr.bf16.mxu0 %v799_v2  ;;  %v808_v8 = vld [vmem:[#allocation5 + $0x34] ss:$8 sps:$4 sm:$0xff]   ;;  %v810_v9 = vld [vmem:[#allocation5 + $0x30] ss:$8 sps:$4 sm:$0xff]   ;;  %v811_v10 = vld [vmem:[#allocation5 + $0x24] ss:$8 sps:$4 sm:$0xff]  }
  0x29   :  { %v813_v11 = vld [vmem:[#allocation5 + $0x20] ss:$8 sps:$4 sm:$0xff]   ;;  %v814_v12 = vld [vmem:[#allocation5 + $0x14] ss:$8 sps:$4 sm:$0xff]   ;;  %v816_v13 = vld [vmem:[#allocation5 + $0x10] ss:$8 sps:$4 sm:$0xff]  }
  0x2a   :  { %v53_v14 = vld [vmem:[#allocation2 + $0x8] sm:$0xff]  ;;  %v817_v15 = vld [vmem:[#allocation5 + $0x4] ss:$8 sps:$4 sm:$0xff]   ;;  %v819_v17 = vld [vmem:[#allocation5] ss:$8 sps:$4 sm:$0xff]   ;;  %s992_s0 = smov [#allocation8]  }
  0x2b   :  { %254 = vmatpush1.bf16.msra.mxu0 %v801_v3  ;;  %v90_v16 = vpack.c.bf16 %v53_v14, %v53_v14  ;;  %v820_v18 = vld [vmem:[#allocation5 + $0xf4] ss:$8 sps:$4 sm:$0xff]   ;;  %v822_v19 = vld [vmem:[#allocation5 + $0xf0] ss:$8 sps:$4 sm:$0xff]   ;;  %v823_v20 = vld [vmem:[#allocation5 + $0xe4] ss:$8 sps:$4 sm:$0xff]  }
  0x2c   :  { %255 = vmatprep.subr.bf16.mxu0 %v802_v4  ;;  %v825_v21 = vld [vmem:[#allocation5 + $0xe0] ss:$8 sps:$4 sm:$0xff]   ;;  %v826_v22 = vld [vmem:[#allocation5 + $0xd4] ss:$8 sps:$4 sm:$0xff]   ;;  %v828_v23 = vld [vmem:[#allocation5 + $0xd0] ss:$8 sps:$4 sm:$0xff]  }
  0x2d   :  { %283 = vmatprep.mubr.bf16.mxu0 %v90_v16  ;;  %v829_v24 = vld [vmem:[#allocation5 + $0xc4] ss:$8 sps:$4 sm:$0xff]   ;;  %v831_v25 = vld [vmem:[#allocation5 + $0xc0] ss:$8 sps:$4 sm:$0xff]   ;;  %v832_v26 = vld [vmem:[#allocation5 + $0xb4] ss:$8 sps:$4 sm:$0xff]  }
  0x2e   :  { %v834_v27 = vld [vmem:[#allocation5 + $0xb0] ss:$8 sps:$4 sm:$0xff]   ;;  %v835_v28 = vld [vmem:[#allocation5 + $0xa4] ss:$8 sps:$4 sm:$0xff]   ;;  %v837_v29 = vld [vmem:[#allocation5 + $0xa0] ss:$8 sps:$4 sm:$0xff]  }
  0x2f   :  { %256 = vmatpush1.bf16.msra.mxu0 %v804_v5  ;;  %v838_v30 = vld [vmem:[#allocation5 + $0x94] ss:$8 sps:$4 sm:$0xff]   ;;  %v840_v31 = vld [vmem:[#allocation5 + $0x90] ss:$8 sps:$4 sm:$0xff]   ;;  %v841_v32 = vld [vmem:[#allocation5 + $0x84] ss:$8 sps:$4 sm:$0xff]  }
  0x30   :  { %257 = vmatprep.subr.bf16.mxu0 %v805_v6  ;;  %v843_v33 = vld [vmem:[#allocation5 + $0x80] ss:$8 sps:$4 sm:$0xff]   ;;  %v52_v34 = vld [vmem:[#allocation2] sm:$0xff]  ;;  %v847_v38 = vld [vmem:[#allocation5 + $0x164] ss:$8 sps:$4 sm:$0xff]   ;;  %s715_s2 = sshll.u32 %s992_s0, 4  ;;  %s716_s2 = int_to_ptr.vmem [resolvable:$true] %s715_s2 }
  0x31   :  { %v89_v35 = vpack.c.bf16 %v52_v34, %v52_v34  ;;  %v844_v36 = vld [vmem:[#allocation5 + $0x174] ss:$8 sps:$4 sm:$0xff]   ;;  %v846_v37 = vld [vmem:[#allocation5 + $0x170] ss:$8 sps:$4 sm:$0xff]   ;;  %v849_v39 = vld [vmem:[#allocation5 + $0x160] ss:$8 sps:$4 sm:$0xff]   ;;  %p965_p2 = scmp.lt.s32.totalorder %s716_s2, %s716_s2 }
  0x32   :  { %579 = vmatprep.subr.bf16.mxu1 %v844_v36  ;;  %v850_v40 = vld [vmem:[#allocation5 + $0x154] ss:$8 sps:$4 sm:$0xff]   ;;  %v852_v41 = vld [vmem:[#allocation5 + $0x150] ss:$8 sps:$4 sm:$0xff]   ;;  %v853_v42 = vld [vmem:[#allocation5 + $0x144] ss:$8 sps:$4 sm:$0xff]  }
  0x33   :  { %258 = vmatpush1.bf16.msra.mxu0 %v807_v7  ;;  %580 = vmatpush1.bf16.msra.mxu1 %v846_v37  ;;  %v855_v43 = vld [vmem:[#allocation5 + $0x140] ss:$8 sps:$4 sm:$0xff]   ;;  %v856_v44 = vld [vmem:[#allocation5 + $0x134] ss:$8 sps:$4 sm:$0xff]   ;;  %v858_v45 = vld [vmem:[#allocation5 + $0x130] ss:$8 sps:$4 sm:$0xff]  }
  0x34   :  { %259 = vmatprep.subr.bf16.mxu0 %v808_v8  ;;  %581 = vmatprep.subr.bf16.mxu1 %v847_v38  ;;  %v859_v46 = vld [vmem:[#allocation5 + $0x124] ss:$8 sps:$4 sm:$0xff]   ;;  %v861_v47 = vld [vmem:[#allocation5 + $0x120] ss:$8 sps:$4 sm:$0xff]   ;;  %v862_v48 = vld [vmem:[#allocation5 + $0x114] ss:$8 sps:$4 sm:$0xff]  }
  0x35   :  { %v864_v49 = vld [vmem:[#allocation5 + $0x110] ss:$8 sps:$4 sm:$0xff]   ;;  %v865_v50 = vld [vmem:[#allocation5 + $0x104] ss:$8 sps:$4 sm:$0xff]   ;;  %v867_v51 = vld [vmem:[#allocation5 + $0x100] ss:$8 sps:$4 sm:$0xff]  }
  0x36   :  { %v868_v52 = vld [vmem:[#allocation5 + $0x1f4] ss:$8 sps:$4 sm:$0xff]   ;;  %v870_v53 = vld [vmem:[#allocation5 + $0x1f0] ss:$8 sps:$4 sm:$0xff]   ;;  %v871_v54 = vld [vmem:[#allocation5 + $0x1e4] ss:$8 sps:$4 sm:$0xff]  }
  0x37   :  { %260 = vmatpush1.bf16.msra.mxu0 %v810_v9  ;;  %582 = vmatpush1.bf16.msra.mxu1 %v849_v39  ;;  %v873_v55 = vld [vmem:[#allocation5 + $0x1e0] ss:$8 sps:$4 sm:$0xff]   ;;  %v874_v56 = vld [vmem:[#allocation5 + $0x1d4] ss:$8 sps:$4 sm:$0xff]   ;;  %v876_v57 = vld [vmem:[#allocation5 + $0x1d0] ss:$8 sps:$4 sm:$0xff]  }
  0x38   :  { %261 = vmatprep.subr.bf16.mxu0 %v811_v10  ;;  %583 = vmatprep.subr.bf16.mxu1 %v850_v40  ;;  %v877_v58 = vld [vmem:[#allocation5 + $0x1c4] ss:$8 sps:$4 sm:$0xff]   ;;  %v879_v59 = vld [vmem:[#allocation5 + $0x1c0] ss:$8 sps:$4 sm:$0xff]   ;;  %v880_v60 = vld [vmem:[#allocation5 + $0x1b4] ss:$8 sps:$4 sm:$0xff]  }
  0x39   :  { %v882_v61 = vld [vmem:[#allocation5 + $0x1b0] ss:$8 sps:$4 sm:$0xff]   ;;  %v883_v62 = vld [vmem:[#allocation5 + $0x1a4] ss:$8 sps:$4 sm:$0xff]   ;;  %v885_v63 = vld [vmem:[#allocation5 + $0x1a0] ss:$8 sps:$4 sm:$0xff]  }
  0x3a   :  { %v886_v0 = vld [vmem:[#allocation5 + $0x194] ss:$8 sps:$4 sm:$0xff]   ;;  %v888_v1 = vld [vmem:[#allocation5 + $0x190] ss:$8 sps:$4 sm:$0xff]   ;;  %v889_v2 = vld [vmem:[#allocation5 + $0x184] ss:$8 sps:$4 sm:$0xff]  }
  0x3b   :  { %262 = vmatpush1.bf16.msra.mxu0 %v813_v11  ;;  %584 = vmatpush1.bf16.msra.mxu1 %v852_v41  ;;  %v891_v3 = vld [vmem:[#allocation5 + $0x180] ss:$8 sps:$4 sm:$0xff]   ;;  %s960_s28 = scalar_lea.vmem %s716_s2, 256 }
  0x3c   :  { %263 = vmatprep.subr.bf16.mxu0 %v814_v12  ;;  %585 = vmatprep.subr.bf16.mxu1 %v853_v42  ;;  %v991_v42 = vmov 1966171168   ;;  %p961_p1 = scmp.ne.s32.totalorder %s716_s2, %s960_s28  ;;  %p966_p3 = scmp.lt.s32.totalorder %s960_s28, %s960_s28 }
  0x3e   :  { %p967_p4 = por %p966_p3, %p965_p2 }
  0x3f   :  { %264 = vmatpush1.bf16.msra.mxu0 %v816_v13  ;;  %586 = vmatpush1.bf16.msra.mxu1 %v855_v43  ;;  %v333_v43 = vunpack.c.l.s4 %v991_v42 }
  0x40   :  { %265 = vmatprep.subr.bf16.mxu0 %v817_v15  ;;  %587 = vmatprep.subr.bf16.mxu1 %v856_v44  ;;  %v335_v44 = vlaneseq  ;;  %p968_p5 = pnand %p967_p4, %p961_p1 }
  0x43   :  { %266 = vmatpush1.bf16.msra.mxu0 %v819_v17  ;;  %588 = vmatpush1.bf16.msra.mxu1 %v858_v45  ;;  %v334_v45 = vunpack.c.0.s8 %v333_v43 }
  0x44   :  { %267 = vmatprep.subr.bf16.mxu0 %v820_v18  ;;  %589 = vmatprep.subr.bf16.mxu1 %v859_v46  ;;  %v336_v46 = vshrl.u32 %v335_v44, 7 }
  0x47   :  { %268 = vmatpush2.bf16.msra.mxu0 %v822_v19  ;;  %590 = vmatpush1.bf16.msra.mxu1 %v861_v47 }
  0x48   :  { %269 = vmatprep.subr.bf16.mxu0 %v823_v20  ;;  %591 = vmatprep.subr.bf16.mxu1 %v862_v48  ;;  %v1022_v48 = vsub.s32 %v334_v45, %v336_v46 }
  0x4b   :  { %270 = vmatpush2.bf16.msra.mxu0 %v825_v21  ;;  %592 = vmatpush1.bf16.msra.mxu1 %v864_v49 }
  0x4c   :  { %271 = vmatprep.subr.bf16.mxu0 %v826_v22  ;;  %593 = vmatprep.subr.bf16.mxu1 %v865_v50 }
  0x4f   :  { %272 = vmatpush2.bf16.msra.mxu0 %v828_v23  ;;  %594 = vmatpush1.bf16.msra.mxu1 %v867_v51 }
  0x50   :  { %273 = vmatprep.subr.bf16.mxu0 %v829_v24  ;;  %595 = vmatprep.subr.bf16.mxu1 %v868_v52  ;;  %v86_v52 = vld [vmem:[#allocation7] ss:$8 sm:$0x3] }
  0x53   :  { %274 = vmatpush2.bf16.msra.mxu0 %v831_v25  ;;  %596 = vmatpush2.bf16.msra.mxu1 %v870_v53 }
  0x54   :  { %275 = vmatprep.subr.bf16.mxu0 %v832_v26  ;;  %597 = vmatprep.subr.bf16.mxu1 %v871_v54  ;;  %v1026_v54 = vsub.s32 0, %v336_v46 }
  0x57   :  { %276 = vmatpush2.bf16.msra.mxu0 %v834_v27  ;;  %598 = vmatpush2.bf16.msra.mxu1 %v873_v55  ;;  %v1028_v55 = vsub.s32 1, %v336_v46 }
  0x58   :  { %277 = vmatprep.subr.bf16.mxu0 %v835_v28  ;;  %599 = vmatprep.subr.bf16.mxu1 %v874_v56  ;;  %v88_v56 = vld [vmem:[#allocation7 + $0x1] ss:$8 sm:$0x3] }
  0x5b   :  { %278 = vmatpush2.bf16.msra.mxu0 %v837_v29  ;;  %600 = vmatpush2.bf16.msra.mxu1 %v876_v57 }
  0x5c   :  { %279 = vmatprep.subr.bf16.mxu0 %v838_v30  ;;  %601 = vmatprep.subr.bf16.mxu1 %v877_v58 }
  0x5f   :  { %280 = vmatpush2.bf16.msra.mxu0 %v840_v31  ;;  %602 = vmatpush2.bf16.msra.mxu1 %v879_v59 }
  0x60   :  { %281 = vmatprep.subr.bf16.mxu0 %v841_v32  ;;  %603 = vmatprep.subr.bf16.mxu1 %v880_v60  ;;  %v365_v60 = vrot.slane %v88_v56, %v1026_v54 }
  0x63   :  { %282 = vmatpush2.bf16.msra.mxu0 %v843_v33  ;;  %604 = vmatpush2.bf16.msra.mxu1 %v882_v61  ;;  %v369_v61 = vrot.slane %v88_v56, %v1028_v55 }
  0x64   :  { %605 = vmatprep.subr.bf16.mxu1 %v883_v62 }
  0x66   :  { %284 = vmatmul.mubr.bf16.vlgmr.msra.gmra.mxu0 %v89_v35 }
  0x67   :  { %606 = vmatpush2.bf16.msra.mxu1 %v885_v63 }
  0x68   :  { %607 = vmatprep.subr.bf16.mxu1 %v886_v0 }
  0x6b   :  { %608 = vmatpush2.bf16.msra.mxu1 %v888_v1 }
  0x6c   :  { %609 = vmatprep.subr.bf16.mxu1 %v889_v2 }
  0x6f   :  { %610 = vmatpush2.bf16.msra.mxu1 %v891_v3 }
 0x126   :  { %v285_v4 = vpop.f32.mrf.mxu0 }
 0x127   :  { %v292_v5 = vrot.slane %v285_v4, 4 }
 0x128   :  { %v287_v6 = vpop.f32.mrf.mxu0 }
 0x129   :  { %v293_v7 = vadd.f32 %v292_v5, %v285_v4  ;;  %v298_v8 = vrot.slane %v287_v6, 4 }
 0x12a   :  { %v289_v9 = vpop.f32.mrf.mxu0 }
 0x12b   :  { %v294_v10 = vrot.slane %v293_v7, 2  ;;  %v299_v11 = vadd.f32 %v298_v8, %v287_v6 }
 0x12c   :  { %v290_v12 = vpop.f32.mrf.mxu0 }
 0x12d   :  { %v295_v13 = vadd.f32 %v294_v10, %v293_v7  ;;  %v300_v14 = vrot.slane %v299_v11, 2 }
 0x12f   :  { %v296_v15 = vrot.slane %v295_v13, 1  ;;  %v301_v16 = vadd.f32 %v300_v14, %v299_v11 }
 0x131   :  { %v297_v17 = vadd.f32 %v296_v15, %v295_v13  ;;  %v302_v18 = vrot.slane %v301_v16, 1 }
 0x133   :  { %v305_v19 = vmul.f32 0.125, %v297_v17  ;;  %v303_v20 = vadd.f32 %v302_v18, %v301_v16 }
 0x135   :  { %v307_v21 = vsub.f32 %v285_v4, %v305_v19  ;;  %v306_v22 = vmul.f32 0.125, %v303_v20 }
 0x137   :  { %v309_v23 = vmul.f32 %v307_v21, %v307_v21  ;;  %v308_v24 = vsub.f32 %v287_v6, %v306_v22 }
 0x139   :  { %v311_v25 = vrot.slane %v309_v23, 4  ;;  %v310_v26 = vmul.f32 %v308_v24, %v308_v24 }
 0x13b   :  { %v312_v27 = vadd.f32 %v311_v25, %v309_v23  ;;  %v317_v28 = vrot.slane %v310_v26, 4 }
 0x13d   :  { %v313_v29 = vrot.slane %v312_v27, 2  ;;  %v318_v30 = vadd.f32 %v317_v28, %v310_v26 }
 0x13f   :  { %v314_v31 = vadd.f32 %v313_v29, %v312_v27  ;;  %v319_v32 = vrot.slane %v318_v30, 2 }
 0x141   :  { %v315_v33 = vrot.slane %v314_v31, 1  ;;  %v320_v34 = vadd.f32 %v319_v32, %v318_v30 }
 0x143   :  { %v316_v35 = vadd.f32 %v315_v33, %v314_v31  ;;  %v321_v36 = vrot.slane %v320_v34, 1 }
 0x145   :  { %v323_v37 = vmul.f32 0.125, %v316_v35  ;;  %v322_v38 = vadd.f32 %v321_v36, %v320_v34 }
 0x147   :  { %v325_v39 = vadd.f32 1e-05, %v323_v37  ;;  %v324_v40 = vmul.f32 0.125, %v322_v38 }
 0x149   :  { %v326_v41 = vadd.f32 1e-05, %v324_v40  ;;  %892 = vrsqrt.f32 %v325_v39 }
 0x14b   :  { %894 = vrsqrt.f32 %v326_v41 }
 0x156   :  { %v893_v47 = vpop.eup %892 }
 0x158   :  { %v895_v49 = vpop.eup %894 }
 0x159   :  { %v331_v50 = vcombine.low %v893_v47, %v895_v49 }
 0x15b   :  { %v338_v51 = vrot.slane %v331_v50, %v1022_v48 }
 0x15d   :  { %v345_v53 = vrot.slane %v338_v51, %v1022_v48  ;;  %v414_v51 = vld [vmem:[#allocation7 + $0x2] ss:$8 sm:$0x3] }
 0x15f   :  { %v347_v57 = vmul.f32 %v345_v53, %v86_v52  ;;  %v416_v53 = vld [vmem:[#allocation7 + $0x3] ss:$8 sm:$0x3] }
 0x161   :  { %v352_v58 = vrot.slane %v347_v57, %v1026_v54  ;;  %v356_v59 = vrot.slane %v347_v57, %v1028_v55 }
 0x163   :  { %v360_v62 = vmul.f32 %v356_v59, %v308_v24  ;;  %v359_v63 = vmul.f32 %v352_v58, %v307_v21  ;;  %v696_v59 = vrot.slane %v416_v53, %v1028_v55 }
 0x165   :  { %v373_v0 = vadd.f32 %v369_v61, %v360_v62  ;;  %v372_v1 = vadd.f32 %v365_v60, %v359_v63  ;;  %v692_v60 = vrot.slane %v416_v53, %v1026_v54 }
 0x167   :  { %vm375_vm0 = vcmp.ge.f32.partialorder %v373_v0, 0.0  ;;  %v377_v2 = vmul.f32 0.2, %v373_v0  ;;  %vm374_vm1 = vcmp.ge.f32.partialorder %v372_v1, 0.0  ;;  %v376_v3 = vmul.f32 0.2, %v372_v1 }
 0x169   :  { %v379_v4 = vsel %vm375_vm0, %v373_v0, %v377_v2  ;;  %v378_v5 = vsel %vm374_vm1, %v372_v1, %v376_v3 }
 0x16a   :  { %v418_v6 = vpack.c.bf16 %v379_v4, %v379_v4  ;;  %v417_v7 = vpack.c.bf16 %v378_v5, %v378_v5 }
 0x16c   :  { %611 = vmatprep.mubr.bf16.mxu1 %v418_v6 }
 0x16d   :  { %612 = vmatmul.mubr.bf16.vlgmr.msra.gmra.mxu1 %v417_v7 }
 0x22d   :  { %v613_v8 = vpop.f32.mrf.mxu1 }
 0x22e   :  { %v620_v9 = vrot.slane %v613_v8, 4 }
 0x22f   :  { %v615_v10 = vpop.f32.mrf.mxu1 }
 0x230   :  { %v621_v11 = vadd.f32 %v620_v9, %v613_v8  ;;  %v626_v12 = vrot.slane %v615_v10, 4 }
 0x231   :  { %v617_v13 = vpop.f32.mrf.mxu1 }
 0x232   :  { %v622_v14 = vrot.slane %v621_v11, 2  ;;  %v627_v15 = vadd.f32 %v626_v12, %v615_v10 }
 0x233   :  { %v618_v16 = vpop.f32.mrf.mxu1 }
 0x234   :  { %v623_v17 = vadd.f32 %v622_v14, %v621_v11  ;;  %v628_v18 = vrot.slane %v627_v15, 2 }
 0x236   :  { %v624_v19 = vrot.slane %v623_v17, 1  ;;  %v629_v20 = vadd.f32 %v628_v18, %v627_v15 }
 0x238   :  { %v625_v21 = vadd.f32 %v624_v19, %v623_v17  ;;  %v630_v22 = vrot.slane %v629_v20, 1 }
 0x23a   :  { %v632_v23 = vmul.f32 0.125, %v625_v21  ;;  %v631_v24 = vadd.f32 %v630_v22, %v629_v20 }
 0x23c   :  { %v634_v25 = vsub.f32 %v613_v8, %v632_v23  ;;  %v633_v26 = vmul.f32 0.125, %v631_v24 }
 0x23e   :  { %v636_v27 = vmul.f32 %v634_v25, %v634_v25  ;;  %v635_v28 = vsub.f32 %v615_v10, %v633_v26 }
 0x240   :  { %v638_v29 = vrot.slane %v636_v27, 4  ;;  %v637_v30 = vmul.f32 %v635_v28, %v635_v28 }
 0x242   :  { %v639_v31 = vadd.f32 %v638_v29, %v636_v27  ;;  %v644_v32 = vrot.slane %v637_v30, 4 }
 0x244   :  { %v640_v33 = vrot.slane %v639_v31, 2  ;;  %v645_v34 = vadd.f32 %v644_v32, %v637_v30 }
 0x246   :  { %v641_v35 = vadd.f32 %v640_v33, %v639_v31  ;;  %v646_v36 = vrot.slane %v645_v34, 2 }
 0x248   :  { %v642_v37 = vrot.slane %v641_v35, 1  ;;  %v647_v38 = vadd.f32 %v646_v36, %v645_v34 }
 0x24a   :  { %v643_v39 = vadd.f32 %v642_v37, %v641_v35  ;;  %v648_v40 = vrot.slane %v647_v38, 1 }
 0x24c   :  { %v650_v41 = vmul.f32 0.125, %v643_v39  ;;  %v649_v42 = vadd.f32 %v648_v40, %v647_v38 }
 0x24e   :  { %v652_v43 = vadd.f32 1e-05, %v650_v41  ;;  %v651_v44 = vmul.f32 0.125, %v649_v42 }
 0x250   :  { %v653_v45 = vadd.f32 1e-05, %v651_v44  ;;  %896 = vrsqrt.f32 %v652_v43 }
 0x252   :  { %898 = vrsqrt.f32 %v653_v45 }
 0x25d   :  { %v897_v46 = vpop.eup %896 }
 0x25f   :  { %v899_v47 = vpop.eup %898 }
 0x260   :  { %v658_v49 = vcombine.low %v897_v46, %v899_v47 }
 0x262   :  { %v665_v50 = vrot.slane %v658_v49, %v1022_v48 }
 0x264   :  { %v672_v52 = vrot.slane %v665_v50, %v1022_v48 }
 0x266   :  { %v674_v56 = vmul.f32 %v672_v52, %v414_v51 }
 0x268   :  { %v679_v57 = vrot.slane %v674_v56, %v1026_v54  ;;  %v683_v58 = vrot.slane %v674_v56, %v1028_v55 }
 0x26a   :  { %v687_v61 = vmul.f32 %v683_v58, %v635_v28  ;;  %v686_v62 = vmul.f32 %v679_v57, %v634_v25 }
 0x26c   :  { %v700_v63 = vadd.f32 %v696_v59, %v687_v61  ;;  %v699_v0 = vadd.f32 %v692_v60, %v686_v62 }
 0x26e   :  { %vm701_vm2 = vcmp.ge.f32.partialorder %v699_v0, 0.0  ;;  %vm702_vm3 = vcmp.ge.f32.partialorder %v700_v63, 0.0  ;;  %v703_v1 = vmul.f32 0.2, %v699_v0  ;;  %v704_v48 = vmul.f32 0.2, %v700_v63 }
 0x270   :  { %v705_v2 = vsel %vm701_vm2, %v699_v0, %v703_v1  ;;  %v706_v3 = vsel %vm702_vm3, %v700_v63, %v704_v48 }
 0x271   :  { %707 = vst [vmem:[#allocation8] sm:$0xff] %v705_v2  ;;  %708 = vst [vmem:[#allocation8 + $0x8] sm:$0xff] %v706_v3 }
 0x272   :  { %971 = shalt.err (!%p968_p5)
}
 0x273   :  { %718 = dma.vmem_to_hbm [thread:$0]  %s716_s2, 256, %s1046_s3, [#allocation4]  }
 0x274   :  { %984 = dma.done.wait [#allocation4], 256  }
 0x275   :  { %985 = vsyncadd [#allocation4], 4294967040 }
 0x276   :  { %722 = vsyncpa [#allocation3], 1 }
 0x277   :  { %723 = vsyncpa [#allocation6], 1 }
 0x278   :  { %724 = vsyncpa [#allocation4], 1 }

</bundles_post_ra>
